<compile_context>
chip_gen: v5e
topology: v5e:2x2
jax: 0.10.0
libtpu: 0.0.40
codegen_flags: <defaults>
</compile_context>

<pallas_src>
import jax
import jax.numpy as jnp
from jax import lax
from jax.experimental import pallas as pl
from jax.experimental.pallas import tpu as pltpu


def _round_up(x, m):
    return (x + m - 1) // m * m


def _embedding_onehot_kernel(ids_ref, table_ref, out_ref):
    # ids_ref  : VMEM (tile, 1)        int32
    # table_ref: VMEM (V_pad, E_pad)   float32  (whole table, same block each step)
    # out_ref  : VMEM (tile, E_pad)    float32
    ids = ids_ref[...]                                   # (tile, 1)
    tile = out_ref.shape[0]
    v_pad = table_ref.shape[0]
    # one-hot via iota + compare, then a single MXU matmul per tile
    iota = lax.broadcasted_iota(jnp.int32, (tile, v_pad), 1)
    one_hot = (iota == ids).astype(table_ref.dtype)      # (tile, V_pad)
    out_ref[...] = jnp.dot(
        one_hot, table_ref[...], preferred_element_type=jnp.float32
    ).astype(out_ref.dtype)


def embedding_lookup(indices, table, *, max_tile=512):
    """indices: integer array of any shape; table: (V, E) float32."""
    V, E = table.shape
    idx_shape = indices.shape
    flat = indices.reshape(-1).astype(jnp.int32)
    n = flat.shape[0]

    # Lane-dense output: pad E to a multiple of 128 (full vreg lanes).
    e_pad = _round_up(E, 128)
    # Sublane-align the vocab dim (cheap, keeps the table block tidy).
    v_pad = _round_up(V, 8)

    # Large tiles (multiple of 8, capped); tiny problems become one grid step.
    tile = min(max_tile, _round_up(max(n, 1), 8))
    n_total = _round_up(max(n, 1), tile)

    if n_total != n:
        flat = jnp.concatenate([flat, jnp.zeros((n_total - n,), jnp.int32)])
    ids2d = flat.reshape(n_total, 1)

    table_p = table
    if (v_pad, e_pad) != (V, E):
        table_p = jnp.pad(table, ((0, v_pad - V), (0, e_pad - E)))

    grid = (n_total // tile,)

    out = pl.pallas_call(
        _embedding_onehot_kernel,
        out_shape=jax.ShapeDtypeStruct((n_total, e_pad), table.dtype),
        grid_spec=pltpu.PrefetchScalarGridSpec(
            num_scalar_prefetch=0,
            grid=grid,
            in_specs=[
                pl.BlockSpec((tile, 1), lambda i: (i, 0)),          # indices
                pl.BlockSpec((v_pad, e_pad), lambda i: (0, 0)),     # full table
            ],
            out_specs=pl.BlockSpec((tile, e_pad), lambda i: (i, 0)),
        ),
        compiler_params=pltpu.CompilerParams(
            dimension_semantics=("parallel",)),
    )(ids2d, table_p)

    return out[:n, :E].reshape(*idx_shape, E)


class ActionSimpleModule:
    """JAX/Pallas port of the PyTorch ActionSimpleModule."""

    def __init__(self, num_actions, action_emb_size, key):
        # nn.Embedding default init: N(0, 1)
        self.weight = jax.random.normal(
            key, (num_actions + 1, action_emb_size), dtype=jnp.float32)

    def __call__(self, prev_action):
        return embedding_lookup(prev_action, self.weight)


if __name__ == "__main__":
    key = jax.random.PRNGKey(0)
    k_w, k_idx = jax.random.split(key)

    num_actions = 10      # vocab = num_actions + 1 = 11
    emb_size = 32
    batch, seq = 2, 8

    module = ActionSimpleModule(num_actions, emb_size, k_w)
    prev_action = jax.random.randint(
        k_idx, (batch, seq), 0, num_actions + 1, dtype=jnp.int32)

    out = module(prev_action)
    out = jax.block_until_ready(out)

    # sanity check against plain-JAX embedding lookup
    ref = jnp.take(module.weight, prev_action, axis=0)
    assert out.shape == (batch, seq, emb_size)
    assert jnp.allclose(out, ref), "mismatch vs reference gather"

    print("KERNEL_OK")
</pallas_src>

<mosaic_0001>
module attributes {stable_mosaic.version = 11 : i64} {
  func.func @_embedding_onehot_kernel(%arg0: i32, %arg1: memref<16x1xi32, #tpu.memory_space<vmem>>, %arg2: memref<16x128xf32, #tpu.memory_space<vmem>>, %arg3: memref<16x128xf32, #tpu.memory_space<vmem>>) attributes {dimension_semantics = [#tpu.dimension_semantics<parallel>], iteration_bounds = array<i64: 1>, scalar_prefetch = 0 : i64, scratch_operands = 0 : i64, tpu.core_type = #tpu.core_type<tc>, window_params = [{transform_indices = @transform_0, window_bounds = array<i64: 16, 1>}, {pipeline_mode = #tpu.pipeline_mode<synchronous>, transform_indices = @transform_1, window_bounds = array<i64: 16, 128>}, {transform_indices = @transform_2, window_bounds = array<i64: 16, 128>}]} {
    %c0 = arith.constant 0 : index
    %c0_0 = arith.constant 0 : index
    %0 = vector.load %arg1[%c0, %c0_0] : memref<16x1xi32, #tpu.memory_space<vmem>>, vector<16x1xi32>
    %1 = tpu.iota {dimensions = array<i32: 1>} : vector<16x16xi32>
    %2 = vector.broadcast %0 : vector<16x1xi32> to vector<16x16xi32>
    %3 = arith.cmpi eq, %1, %2 : vector<16x16xi32>
    %4 = arith.extui %3 : vector<16x16xi1> to vector<16x16xi32>
    %5 = arith.sitofp %4 : vector<16x16xi32> to vector<16x16xf32>
    %c0_1 = arith.constant 0 : index
    %c0_2 = arith.constant 0 : index
    %6 = vector.load %arg2[%c0_1, %c0_2] : memref<16x128xf32, #tpu.memory_space<vmem>>, vector<16x128xf32>
    %cst = arith.constant dense<0.000000e+00> : vector<16x128xf32>
    %7 = tpu.matmul %5, %6, %cst {dimension_numbers = #tpu.dot_dimension_numbers<[1], [0], [0], [1], [0, 0, 1, 1], [], []>} : vector<16x16xf32>, vector<16x128xf32>, vector<16x128xf32> -> vector<16x128xf32>
    %c0_3 = arith.constant 0 : index
    %c0_4 = arith.constant 0 : index
    %8 = vector.load %arg3[%c0_3, %c0_4] : memref<16x128xf32, #tpu.memory_space<vmem>>, vector<16x128xf32>
    tpu.vector_store %arg3[%c0_3, %c0_4], %7 {strides = array<i32>} : memref<16x128xf32, #tpu.memory_space<vmem>>, vector<16x128xf32>,
    return
  }
  func.func @transform_0(%arg0: i32) -> (i32, i32) {
    %c0_i32 = arith.constant 0 : i32
    %c0_i32_0 = arith.constant 0 : i32
    return %arg0, %c0_i32 : i32, i32
  }
  func.func @transform_1(%arg0: i32) -> (i32, i32) {
    %c0_i32 = arith.constant 0 : i32
    %c0_i32_0 = arith.constant 0 : i32
    %c0_i32_1 = arith.constant 0 : i32
    return %c0_i32, %c0_i32_0 : i32, i32
  }
  func.func @transform_2(%arg0: i32) -> (i32, i32) {
    %c0_i32 = arith.constant 0 : i32
    %c0_i32_0 = arith.constant 0 : i32
    return %arg0, %c0_i32 : i32, i32
  }
}

</mosaic_0001>

<bundles_post_ra>
// kernel: tpu_custom_call.1
= control target key start
LH: loop header
LB: loop body
LE: loop exit
PB: predicated region body
PF: predicated region fallthrough
CT: control target
= control target key end

     0   :  { %v118_v2 = vmov 0   ;;  %s153_s0 = inlined_call_operand.vmem [shape: s32[16,1], index: 0, kind: input, shape index: {}]   ;;  %s154_s1 = inlined_call_operand.vmem [shape: f32[16,128], index: 1, kind: input, shape index: {}]   ;;  %s155_s2 = inlined_call_operand.hbm [shape: f32[16,128], index: 2, kind: output, shape index: {}]  }
   0x1   :  { %v12_v0 = vld [vmem:[%s153_s0] sm:$0xff]  ;;  %v29_v1 = vld [vmem:[%s154_s1 + $0x8] sm:$0xff]  ;;  %91 = vset.pattern.permute.xlu0 %v118_v2 }
   0x2   :  { %51 = vmatpush.msra.mxu0 %v29_v1 }
   0x3   :  { %7 = vsyncpa [#allocation3], 0  ;;  %17 = vperm.xlu0 %91, %v12_v0   ;;  %84 = vmatpush.msra.mxu1 %v29_v1  ;;  %v13_v3 = vld [vmem:[%s153_s0 + $0x8] sm:$0xff]  ;;  %v28_v4 = vld [vmem:[%s154_s1] sm:$0xff]  ;;  %v14_v5 = vlaneseq  ;;  %vm30_vm0 = vcmask 130048   ;;  %v119_v8 = vmov 0.0  }
   0x4   :  { %52 = vmatpush.msra.mxu0 %v28_v4  ;;  %s120_s0 = smov [#allocation2]   ;;  %s68_s19 = sshll.u32 %s155_s2, 4  ;;  %s69_s19 = int_to_ptr.hbm [resolvable:$true] %s68_s19 }
   0x5   :  { %85 = vmatpush.msra.mxu1 %v28_v4  ;;  %v15_v6 = vand.u32 127, %v14_v5  ;;  %s66_s17 = sshll.u32 %s120_s0, 4  ;;  %s121_s20 = smov 128   ;;  %s67_s17 = int_to_ptr.vmem [resolvable:$true] %s66_s17 }
   0x6   :  { %s122_s21 = smov 8  }
   0xb   :  { %20 = vperm.xlu0 %91, %v13_v3  }
  0x75   :  { %v18_v7 = vpop.permute.xlu0 %17 }
  0x76   :  { %vm22_vm1 = vcmp.eq.s32.totalorder %v15_v6, %v18_v7 }
  0x77   :  { %v80_v9 = vsel %vm22_vm1, 1.0, %v119_v8 }
  0x78   :  { %82 = vmatmul.msk.f32.vlgmr.msra.gmra.mxu0 %vm30_vm0, %v80_v9 }
  0x7d   :  { %v21_v10 = vpop.permute.xlu0 %20 }
  0x7e   :  { %vm23_vm2 = vcmp.eq.s32.totalorder %v15_v6, %v21_v10 }
  0x7f   :  { %v81_v11 = vsel %vm23_vm2, 1.0, %v119_v8 }
  0x80   :  { %83 = vmatmul.msk.f32.vlgmr.msra.gmra.mxu1 %vm30_vm0, %v81_v11 }
  0xf5   :  { %v54_v12 = vpop.f32.mrf.mxu0 }
  0xf6   :  { %60 = vst [vmem:[#allocation2] sm:$0xff] %v54_v12 }
  0xfd   :  { %v57_v13 = vpop.f32.mrf.mxu1 }
  0xfe   :  { %61 = vst [vmem:[#allocation2 + $0x8] sm:$0xff] %v57_v13 }
  0xff   :  { %74 = dma.vmem_to_hbm [thread:$0]  %s67_s17, 256, %s69_s19, [#allocation3], %s121_s20, %s121_s20, %s122_s21  }
 0x100   :  { %116 = dma.done.wait [#allocation3], 256  }
 0x101   :  { %117 = vsyncadd [#allocation3], 4294967040 }
 0x102   :  { %79 = vsyncpa [#allocation3], 1 }

</bundles_post_ra>
